<compile_context>
chip_gen: v7x
topology: tpu7x:2x2x1
jax: 0.10.0
libtpu: 0.0.40
codegen_flags: <defaults>
</compile_context>

<pallas_src>
import functools

import jax
import jax.numpy as jnp
from jax.experimental import pallas as pl
from jax.experimental.pallas import tpu as pltpu


def _round_up(x, m):
    return ((x + m - 1) // m) * m


def _cdiv(a, b):
    return (a + b - 1) // b


def _choose_tile(batch, tile_b):
    """Pick (tile_rows, num_tiles) for the batch axis.

    Small batches run as one full-array tile (no padding, no partial blocks).
    Larger batches use lane-aligned tiles (multiple of 128, so the (1, tb)
    output blocks are lane-dense) capped so the grid has >= 2 steps, letting
    the "parallel" batch axis shard across both v7x TensorCores.
    """
    if batch <= 256 and batch <= max(tile_b, 8):
        return max(batch, 1), 1
    tb = min(_round_up(tile_b, 128), _round_up(_cdiv(batch, 2), 128))
    tb = max(tb, 128)
    return tb, _cdiv(batch, tb)


def _mlp_kernel_obs_act(obs_ref, act_ref, w1o_ref, w1a_ref, b1_ref,
                        w2_ref, b2_ref, w3_ref, b3_ref, o_ref, *, compute_dtype):
    """relu(cat(obs,act) @ W1 + b1) -> relu(. @ W2 + b2) -> . @ w3 + b3.

    The concat is fused by splitting W1:  cat(o, a) @ W1 == o @ W1o + a @ W1a.
    Activations arrive in f32 and are cast to the MXU dtype here (a tiny VPU
    pass per tile, hidden under the matmuls). Accumulation stays f32.
    """
    h1 = jnp.dot(obs_ref[...].astype(compute_dtype), w1o_ref[...],
                 preferred_element_type=jnp.float32)
    h1 = h1 + jnp.dot(act_ref[...].astype(compute_dtype), w1a_ref[...],
                      preferred_element_type=jnp.float32)
    h1 = jnp.maximum(h1 + b1_ref[...], 0.0)

    h2 = jnp.dot(h1.astype(compute_dtype), w2_ref[...],
                 preferred_element_type=jnp.float32)
    h2 = jnp.maximum(h2 + b2_ref[...], 0.0)

    # q head: (8, H) zero-padded w3 contracted with the H axis of h2 (NT
    # matmul) -> (8, tb) with the batch along lanes; row 0 is the real q.
    q8 = jax.lax.dot_general(w3_ref[...], h2, (((1,), (1,)), ((), ())),
                             preferred_element_type=jnp.float32)
    o_ref[...] = (q8[0:1, :] + b3_ref[0, 0]).astype(o_ref.dtype)


def _mlp_kernel_obs(x_ref, w1_ref, b1_ref, w2_ref, b2_ref, w3_ref, b3_ref,
                    o_ref, *, compute_dtype):
    """Same MLP without the action input (action_dims is None)."""
    h1 = jnp.dot(x_ref[...].astype(compute_dtype), w1_ref[...],
                 preferred_element_type=jnp.float32)
    h1 = jnp.maximum(h1 + b1_ref[...], 0.0)

    h2 = jnp.dot(h1.astype(compute_dtype), w2_ref[...],
                 preferred_element_type=jnp.float32)
    h2 = jnp.maximum(h2 + b2_ref[...], 0.0)

    q8 = jax.lax.dot_general(w3_ref[...], h2, (((1,), (1,)), ((), ())),
                             preferred_element_type=jnp.float32)
    o_ref[...] = (q8[0:1, :] + b3_ref[0, 0]).astype(o_ref.dtype)


def flatten_mlp_forward(obs, params, action=None, *, tile_b=2048,
                        compute_dtype=jnp.bfloat16):
    """Pallas-backed forward of flatten_mlp.

    obs:    [B, input_dims] float32
    action: optional [B, action_dims] float32 (the PyTorch concat along dim=1
            is fused into the kernel via a split W1 -- no [B, D] concat in HBM)
    params: dict with w1 [D_in, H], b1 [1, H], w2 [H, H], b2 [1, H],
            w3 [H, 1], b3 [1, 1]  (weights stored transposed vs nn.Linear)
    compute_dtype: MXU input dtype (bf16 default, f32 optional); accumulation
            and all elementwise math stay f32.
    returns [B, 1] float32
    """
    B = obs.shape[0]
    d_total, H = params["w1"].shape

    tb, n_tiles = _choose_tile(B, tile_b)
    b_pad = tb * n_tiles
    itemsize = jnp.dtype(compute_dtype).itemsize

    # Weights are tiny: cast once here. Activations are cast in-kernel.
    w1 = params["w1"].astype(compute_dtype)
    w2 = params["w2"].astype(compute_dtype)
    b1 = params["b1"].reshape(1, H).astype(jnp.float32)
    b2 = params["b2"].reshape(1, H).astype(jnp.float32)
    w3_pad = jnp.zeros((8, H), jnp.float32).at[0].set(
        params["w3"].reshape(H).astype(jnp.float32))
    b3 = params["b3"].reshape(1, 1).astype(jnp.float32)

    pinned = lambda shape: pl.BlockSpec(shape, lambda i: (0, 0))       # VMEM-resident
    batched = lambda cols: pl.BlockSpec((tb, cols), lambda i: (i, 0))  # pipelined tiles
    smem_scalar = pl.BlockSpec(memory_space=pltpu.MemorySpace.SMEM)    # b3 scalar

    if action is not None:
        d_obs, d_act = obs.shape[1], action.shape[1]
        assert d_obs + d_act == d_total
        kernel = functools.partial(_mlp_kernel_obs_act, compute_dtype=compute_dtype)
        inputs = (obs, action, w1[:d_obs], w1[d_obs:], b1, w2, b2, w3_pad, b3)
        in_specs = [
            batched(d_obs), batched(d_act),
            pinned((d_obs, H)), pinned((d_act, H)), pinned((1, H)),
            pinned((H, H)), pinned((1, H)), pinned((8, H)),
            smem_scalar,
        ]
        stream_tiles = [(tb, d_obs, 4), (tb, d_act, 4)]
        weight_tiles = [(d_obs, H, itemsize), (d_act, H, itemsize), (1, H, 4),
                        (H, H, itemsize), (1, H, 4), (8, H, 4)]
        in_bytes = (obs.size + action.size) * 4
    else:
        assert obs.shape[1] == d_total
        kernel = functools.partial(_mlp_kernel_obs, compute_dtype=compute_dtype)
        inputs = (obs, w1, b1, w2, b2, w3_pad, b3)
        in_specs = [
            batched(d_total),
            pinned((d_total, H)), pinned((1, H)),
            pinned((H, H)), pinned((1, H)), pinned((8, H)),
            smem_scalar,
        ]
        stream_tiles = [(tb, d_total, 4)]
        weight_tiles = [(d_total, H, itemsize), (1, H, 4),
                        (H, H, itemsize), (1, H, 4), (8, H, 4)]
        in_bytes = obs.size * 4
    stream_tiles.append((1, tb, 4))  # lane-dense output row

    # VMEM budget: lane/sublane-padded footprints, double-buffered pipeline
    # tiles + pinned weights + the [tb, H] f32 intermediates; cap at 48 MiB so
    # the same tiling fits v7x's 64 MiB VMEM (v5e/v6e have 128 MiB).
    def padded_bytes(rows, cols, size):
        return _round_up(rows, 8) * _round_up(cols, 128) * size

    vmem_need = (2 * sum(padded_bytes(*t) for t in stream_tiles)
                 + 2 * sum(padded_bytes(*t) for t in weight_tiles)
                 + 2 * tb * H * 4)
    vmem_limit = int(min(max(vmem_need + (16 << 20), 32 << 20), 48 << 20))

    weight_raw_bytes = sum(r * c * s for r, c, s in weight_tiles)
    flops = 2 * b_pad * (d_total * H + H * H + 8 * H)

    out = pl.pallas_call(
        kernel,
        out_shape=jax.ShapeDtypeStruct((1, b_pad), jnp.float32),
        grid=(n_tiles,),
        in_specs=in_specs,
        out_specs=pl.BlockSpec((1, tb), lambda i: (0, i)),
        compiler_params=pltpu.CompilerParams(
            dimension_semantics=("parallel",),   # megacore sharding on v7x
            vmem_limit_bytes=vmem_limit,
        ),
        cost_estimate=pl.CostEstimate(
            flops=flops,
            bytes_accessed=in_bytes + weight_raw_bytes + b_pad * 4,
            transcendentals=0,
        ),
    )(*inputs)
    return out[0, :B].reshape(B, 1)


def init_params(key, input_dims, hidden_size, action_dims=None):
    """Deterministic init mimicking nn.Linear's U(-1/sqrt(fan_in), 1/sqrt(fan_in))."""
    d_in = input_dims + (action_dims if action_dims is not None else 0)
    ks = jax.random.split(key, 6)

    def lin(kw, kb, fan_in, fan_out):
        bound = 1.0 / jnp.sqrt(jnp.float32(fan_in))
        w = jax.random.uniform(kw, (fan_in, fan_out), jnp.float32, -bound, bound)
        b = jax.random.uniform(kb, (1, fan_out), jnp.float32, -bound, bound)
        return w, b

    w1, b1 = lin(ks[0], ks[1], d_in, hidden_size)
    w2, b2 = lin(ks[2], ks[3], hidden_size, hidden_size)
    w3, b3 = lin(ks[4], ks[5], hidden_size, 1)
    return {"w1": w1, "b1": b1, "w2": w2, "b2": b2, "w3": w3, "b3": b3}


def mlp_reference(obs, params, action=None):
    """Pure-JAX reference matching the PyTorch forward semantics."""
    x = jnp.concatenate([obs, action], axis=1) if action is not None else obs
    h1 = jnp.maximum(x @ params["w1"] + params["b1"], 0.0)
    h2 = jnp.maximum(h1 @ params["w2"] + params["b2"], 0.0)
    return h2 @ params["w3"] + params["b3"]


if __name__ == "__main__":
    key = jax.random.PRNGKey(0)
    k_obs, k_act, k_par, k_big = jax.random.split(key, 4)

    batch = 8
    input_dims = 16
    action_dims = 8
    hidden_size = 128   # multiple of 128 -> lane-dense hidden activations

    obs = jax.random.normal(k_obs, (batch, input_dims), jnp.float32)
    action = jax.random.normal(k_act, (batch, action_dims), jnp.float32)
    params = init_params(k_par, input_dims, hidden_size, action_dims)
    q_ref = mlp_reference(obs, params, action)

    # 1) f32 MXU path, obs + action.
    q_f32 = jax.block_until_ready(
        flatten_mlp_forward(obs, params, action, compute_dtype=jnp.float32))
    assert q_f32.shape == (batch, 1)
    assert jnp.allclose(q_f32, q_ref, atol=1e-4, rtol=1e-4), \
        float(jnp.max(jnp.abs(q_f32 - q_ref)))

    # 2) default bf16 MXU path (f32 accumulation).
    q_bf16 = jax.block_until_ready(flatten_mlp_forward(obs, params, action))
    assert float(jnp.max(jnp.abs(q_bf16 - q_ref))) < 1e-1

    # 3) obs-only path (action_dims is None in the module).
    params2 = init_params(k_par, input_dims, hidden_size, None)
    q_ref2 = mlp_reference(obs, params2)
    q2 = jax.block_until_ready(flatten_mlp_forward(obs, params2))
    assert float(jnp.max(jnp.abs(q2 - q_ref2))) < 1e-1

    # 4) multi-tile grid (>= 2 tiles, partial last input block), bf16 default.
    big_b = 300
    obs_big = jax.random.normal(k_big, (big_b, input_dims), jnp.float32)
    act_big = jax.random.normal(k_big, (big_b, action_dims), jnp.float32)
    q_ref_big = mlp_reference(obs_big, params, act_big)
    q_big = jax.block_until_ready(flatten_mlp_forward(obs_big, params, act_big))
    assert q_big.shape == (big_b, 1)
    assert float(jnp.max(jnp.abs(q_big - q_ref_big))) < 1e-1

    print("KERNEL_OK")
</pallas_src>

<mosaic_0001>
module attributes {stable_mosaic.version = 11 : i64} {
  func.func @_mlp_kernel_obs_act(%arg0: i32, %arg1: memref<8x16xf32, #tpu.memory_space<vmem>>, %arg2: memref<8x8xf32, #tpu.memory_space<vmem>>, %arg3: memref<16x128xf32, #tpu.memory_space<vmem>>, %arg4: memref<8x128xf32, #tpu.memory_space<vmem>>, %arg5: memref<1x128xf32, #tpu.memory_space<vmem>>, %arg6: memref<128x128xf32, #tpu.memory_space<vmem>>, %arg7: memref<1x128xf32, #tpu.memory_space<vmem>>, %arg8: memref<8x128xf32, #tpu.memory_space<vmem>>, %arg9: memref<1x1xf32, #tpu.memory_space<smem>>, %arg10: memref<1x8xf32, #tpu.memory_space<vmem>>) attributes {dimension_semantics = [#tpu.dimension_semantics<parallel>], iteration_bounds = array<i64: 1>, scalar_prefetch = 0 : i64, scratch_operands = 0 : i64, tpu.core_type = #tpu.core_type<tc>, window_params = [{transform_indices = @transform_0, window_bounds = array<i64: 8, 16>}, {transform_indices = @transform_1, window_bounds = array<i64: 8, 8>}, {pipeline_mode = #tpu.pipeline_mode<synchronous>, transform_indices = @transform_2, window_bounds = array<i64: 16, 128>}, {pipeline_mode = #tpu.pipeline_mode<synchronous>, transform_indices = @transform_3, window_bounds = array<i64: 8, 128>}, {pipeline_mode = #tpu.pipeline_mode<synchronous>, transform_indices = @transform_4, window_bounds = array<i64: 1, 128>}, {pipeline_mode = #tpu.pipeline_mode<synchronous>, transform_indices = @transform_5, window_bounds = array<i64: 128, 128>}, {pipeline_mode = #tpu.pipeline_mode<synchronous>, transform_indices = @transform_6, window_bounds = array<i64: 1, 128>}, {pipeline_mode = #tpu.pipeline_mode<synchronous>, transform_indices = @transform_7, window_bounds = array<i64: 8, 128>}, {transform_indices = @transform_8, window_bounds = array<i64: 1, 1>}, {transform_indices = @transform_9, window_bounds = array<i64: 1, 8>}]} {
    %c0 = arith.constant 0 : index
    %c0_0 = arith.constant 0 : index
    %0 = vector.load %arg1[%c0, %c0_0] : memref<8x16xf32, #tpu.memory_space<vmem>>, vector<8x16xf32>
    %c0_1 = arith.constant 0 : index
    %c0_2 = arith.constant 0 : index
    %1 = vector.load %arg3[%c0_1, %c0_2] : memref<16x128xf32, #tpu.memory_space<vmem>>, vector<16x128xf32>
    %cst = arith.constant dense<0.000000e+00> : vector<8x128xf32>
    %2 = tpu.matmul %0, %1, %cst {dimension_numbers = #tpu.dot_dimension_numbers<[1], [0], [0], [1], [0, 0, 1, 1], [], []>} : vector<8x16xf32>, vector<16x128xf32>, vector<8x128xf32> -> vector<8x128xf32>
    %c0_3 = arith.constant 0 : index
    %c0_4 = arith.constant 0 : index
    %3 = vector.load %arg2[%c0_3, %c0_4] : memref<8x8xf32, #tpu.memory_space<vmem>>, vector<8x8xf32>
    %c0_5 = arith.constant 0 : index
    %c0_6 = arith.constant 0 : index
    %4 = vector.load %arg4[%c0_5, %c0_6] : memref<8x128xf32, #tpu.memory_space<vmem>>, vector<8x128xf32>
    %cst_7 = arith.constant dense<0.000000e+00> : vector<8x128xf32>
    %5 = tpu.matmul %3, %4, %cst_7 {dimension_numbers = #tpu.dot_dimension_numbers<[1], [0], [0], [1], [0, 0, 1, 1], [], []>} : vector<8x8xf32>, vector<8x128xf32>, vector<8x128xf32> -> vector<8x128xf32>
    %6 = arith.addf %2, %5 : vector<8x128xf32>
    %c0_8 = arith.constant 0 : index
    %c0_9 = arith.constant 0 : index
    %7 = vector.load %arg5[%c0_8, %c0_9] : memref<1x128xf32, #tpu.memory_space<vmem>>, vector<1x128xf32>
    %8 = vector.broadcast %7 : vector<1x128xf32> to vector<8x128xf32>
    %9 = arith.addf %6, %8 : vector<8x128xf32>
    %cst_10 = arith.constant 0.000000e+00 : f32
    %10 = vector.broadcast %cst_10 : f32 to vector<8x128xf32>
    %11 = arith.maximumf %9, %10 : vector<8x128xf32>
    %c0_11 = arith.constant 0 : index
    %c0_12 = arith.constant 0 : index
    %12 = vector.load %arg6[%c0_11, %c0_12] : memref<128x128xf32, #tpu.memory_space<vmem>>, vector<128x128xf32>
    %cst_13 = arith.constant dense<0.000000e+00> : vector<8x128xf32>
    %13 = tpu.matmul %11, %12, %cst_13 {dimension_numbers = #tpu.dot_dimension_numbers<[1], [0], [0], [1], [0, 0, 1, 1], [], []>} : vector<8x128xf32>, vector<128x128xf32>, vector<8x128xf32> -> vector<8x128xf32>
    %c0_14 = arith.constant 0 : index
    %c0_15 = arith.constant 0 : index
    %14 = vector.load %arg7[%c0_14, %c0_15] : memref<1x128xf32, #tpu.memory_space<vmem>>, vector<1x128xf32>
    %15 = vector.broadcast %14 : vector<1x128xf32> to vector<8x128xf32>
    %16 = arith.addf %13, %15 : vector<8x128xf32>
    %cst_16 = arith.constant 0.000000e+00 : f32
    %17 = vector.broadcast %cst_16 : f32 to vector<8x128xf32>
    %18 = arith.maximumf %16, %17 : vector<8x128xf32>
    %c0_17 = arith.constant 0 : index
    %c0_18 = arith.constant 0 : index
    %19 = vector.load %arg8[%c0_17, %c0_18] : memref<8x128xf32, #tpu.memory_space<vmem>>, vector<8x128xf32>
    %cst_19 = arith.constant dense<0.000000e+00> : vector<8x8xf32>
    %20 = tpu.matmul %19, %18, %cst_19 {dimension_numbers = #tpu.dot_dimension_numbers<[1], [1], [0], [0], [0, 0, 1, 0], [], []>} : vector<8x128xf32>, vector<8x128xf32>, vector<8x8xf32> -> vector<8x8xf32>
    %21 = vector.extract_strided_slice %20 {offsets = [0, 0], sizes = [1, 8], strides = [1, 1]} : vector<8x8xf32> to vector<1x8xf32>
    %c0_20 = arith.constant 0 : index
    %c0_21 = arith.constant 0 : index
    %22 = memref.load %arg9[%c0_20, %c0_21] : memref<1x1xf32, #tpu.memory_space<smem>>
    %23 = vector.broadcast %22 : f32 to vector<1x8xf32>
    %24 = arith.addf %21, %23 : vector<1x8xf32>
    %c0_22 = arith.constant 0 : index
    %c0_23 = arith.constant 0 : index
    %25 = vector.load %arg10[%c0_22, %c0_23] : memref<1x8xf32, #tpu.memory_space<vmem>>, vector<1x8xf32>
    tpu.vector_store %arg10[%c0_22, %c0_23], %24 {strides = array<i32>} : memref<1x8xf32, #tpu.memory_space<vmem>>, vector<1x8xf32>,
    return
  }
  func.func @transform_0(%arg0: i32) -> (i32, i32) {
    %c0_i32 = arith.constant 0 : i32
    %c0_i32_0 = arith.constant 0 : i32
    return %arg0, %c0_i32 : i32, i32
  }
  func.func @transform_1(%arg0: i32) -> (i32, i32) {
    %c0_i32 = arith.constant 0 : i32
    %c0_i32_0 = arith.constant 0 : i32
    return %arg0, %c0_i32 : i32, i32
  }
  func.func @transform_2(%arg0: i32) -> (i32, i32) {
    %c0_i32 = arith.constant 0 : i32
    %c0_i32_0 = arith.constant 0 : i32
    %c0_i32_1 = arith.constant 0 : i32
    return %c0_i32, %c0_i32_0 : i32, i32
  }
  func.func @transform_3(%arg0: i32) -> (i32, i32) {
    %c0_i32 = arith.constant 0 : i32
    %c0_i32_0 = arith.constant 0 : i32
    %c0_i32_1 = arith.constant 0 : i32
    return %c0_i32, %c0_i32_0 : i32, i32
  }
  func.func @transform_4(%arg0: i32) -> (i32, i32) {
    %c0_i32 = arith.constant 0 : i32
    %c0_i32_0 = arith.constant 0 : i32
    %c0_i32_1 = arith.constant 0 : i32
    return %c0_i32, %c0_i32_0 : i32, i32
  }
  func.func @transform_5(%arg0: i32) -> (i32, i32) {
    %c0_i32 = arith.constant 0 : i32
    %c0_i32_0 = arith.constant 0 : i32
    %c0_i32_1 = arith.constant 0 : i32
    return %c0_i32, %c0_i32_0 : i32, i32
  }
  func.func @transform_6(%arg0: i32) -> (i32, i32) {
    %c0_i32 = arith.constant 0 : i32
    %c0_i32_0 = arith.constant 0 : i32
    %c0_i32_1 = arith.constant 0 : i32
    return %c0_i32, %c0_i32_0 : i32, i32
  }
  func.func @transform_7(%arg0: i32) -> (i32, i32) {
    %c0_i32 = arith.constant 0 : i32
    %c0_i32_0 = arith.constant 0 : i32
    %c0_i32_1 = arith.constant 0 : i32
    return %c0_i32, %c0_i32_0 : i32, i32
  }
  func.func @transform_8(%arg0: i32) -> (i32, i32) {
    %c0_i32 = arith.constant 0 : i32
    %c0_i32_0 = arith.constant 0 : i32
    %c0_i32_1 = arith.constant 0 : i32
    return %c0_i32, %c0_i32_0 : i32, i32
  }
  func.func @transform_9(%arg0: i32) -> (i32, i32) {
    %c0_i32 = arith.constant 0 : i32
    %c0_i32_0 = arith.constant 0 : i32
    return %c0_i32, %arg0 : i32, i32
  }
}

</mosaic_0001>

<bundles_post_ra>
// kernel: tpu_custom_call.1
= control target key start
LH: loop header
LB: loop body
LE: loop exit
PB: predicated region body
PF: predicated region fallthrough
CT: control target
= control target key end

     0   :  { %15 = vsyncpa [#allocation4], 0  ;;  %s808_s0 = inlined_call_operand.hbm [shape: f32[8,16], index: 0, kind: input, shape index: {}]   ;;  %s809_s1 = inlined_call_operand.hbm [shape: f32[8,8], index: 1, kind: input, shape index: {}]   ;;  %s810_s2 = inlined_call_operand.hbm [shape: f32[16,128], index: 2, kind: input, shape index: {}]   ;;  %s811_s3 = inlined_call_operand.vmem [shape: f32[8,128], index: 3, kind: input, shape index: {}]   ;;  %s812_s4 = inlined_call_operand.vmem [shape: f32[1,128], index: 4, kind: input, shape index: {}]   ;;  %s813_s5 = inlined_call_operand.hbm [shape: f32[128,128], index: 5, kind: input, shape index: {}]   ;;  %s814_s6 = inlined_call_operand.vmem [shape: f32[1,128], index: 6, kind: input, shape index: {}]   ;;  %s815_s7 = inlined_call_operand.vmem [shape: f32[8,128], index: 7, kind: input, shape index: {}]   ;;  %s816_s8 = inlined_call_operand.<no memory space> [shape: f32[1,1], index: 8, kind: input, shape index: {}]   ;;  %s817_s9 = inlined_call_operand.hbm [shape: f32[1,8], index: 9, kind: output, shape index: {}]  }
   0x1   :  { %16 = vsyncpa [#allocation7], 0 }
   0x2   :  { %17 = vsyncpa [#allocation10], 0 }
   0x3   :  { %18 = vsyncpa [#allocation5], 0  ;;  %s669_s30 = smov [#allocation6]   ;;  %s670_s11 = smov [#allocation3]  }
   0x4   :  { %s35_s10 = sshll.u32 %s669_s30, 4  ;;  %s25_s12 = sshll.u32 %s670_s11, 4  ;;  %s36_s10 = int_to_ptr.vmem [resolvable:$true] %s35_s10  ;;  %s26_s12 = int_to_ptr.vmem [resolvable:$true] %s25_s12 }
   0x5   :  { %s551_s15 = scalar_lea.hbm %s809_s1, 128 }
   0x6   :  { %p552_p0 = scmp.ne.s32.totalorder %s809_s1, %s551_s15  ;;  %p555_p1 = scmp.lt.u32.totalorder %s551_s15, %s809_s1 }
   0x8   :  { %p557_p2 = pnand %p555_p1, %p552_p0 }
   0xa   :  { %560 = shalt.err (!%p557_p2)
}
   0xb   :  { %s561_s20 = scalar_lea.vmem %s36_s10, 128  ;;  %p566_p4 = scmp.lt.s32.totalorder %s36_s10, %s36_s10 }
   0xc   :  { %p562_p3 = scmp.ne.s32.totalorder %s36_s10, %s561_s20  ;;  %p567_p5 = scmp.lt.s32.totalorder %s561_s20, %s561_s20 }
   0xe   :  { %p568_p6 = por %p567_p5, %p566_p4 }
  0x10   :  { %p569_p7 = pnand %p568_p6, %p562_p3 }
  0x12   :  { %572 = shalt.err (!%p569_p7)
}
  0x13   :  { %38 = dma.hbm_to_vmem [thread:$0]  %s809_s1, 128, %s36_s10, [#allocation7]  }
  0x14   :  { %s573_s25 = scalar_lea.hbm %s808_s0, 128 }
  0x15   :  { %p574_p8 = scmp.ne.s32.totalorder %s808_s0, %s573_s25  ;;  %p577_p9 = scmp.lt.u32.totalorder %s573_s25, %s808_s0 }
  0x17   :  { %p579_p10 = pnand %p577_p9, %p574_p8 }
  0x19   :  { %582 = shalt.err (!%p579_p10)
}
  0x1a   :  { %s583_s30 = scalar_lea.vmem %s26_s12, 128  ;;  %p588_p12 = scmp.lt.s32.totalorder %s26_s12, %s26_s12 }
  0x1b   :  { %p584_p11 = scmp.ne.s32.totalorder %s26_s12, %s583_s30  ;;  %p589_p13 = scmp.lt.s32.totalorder %s583_s30, %s583_s30 }
  0x1d   :  { %p590_p0 = por %p589_p13, %p588_p12 }
  0x1f   :  { %p591_p1 = pnand %p590_p0, %p584_p11 }
  0x21   :  { %594 = shalt.err (!%p591_p1)
}
  0x22   :  { %28 = dma.hbm_to_vmem [thread:$0]  %s808_s0, 128, %s26_s12, [#allocation4]  }
  0x23   :  { %s671_s11 = smov [#allocation8]   ;;  %s595_s16 = scalar_lea.hbm %s810_s2, 256 }
  0x24   :  { %s44_s13 = sshll.u32 %s671_s11, 4  ;;  %p596_p2 = scmp.ne.s32.totalorder %s810_s2, %s595_s16  ;;  %s45_s13 = int_to_ptr.vmem [resolvable:$true] %s44_s13 }
  0x25   :  { %p599_p3 = scmp.lt.u32.totalorder %s595_s16, %s810_s2 }
  0x27   :  { %p601_p4 = pnand %p599_p3, %p596_p2 }
  0x29   :  { %604 = shalt.err (!%p601_p4)
}
  0x2a   :  { %s605_s21 = scalar_lea.vmem %s45_s13, 256  ;;  %p610_p6 = scmp.lt.s32.totalorder %s45_s13, %s45_s13 }
  0x2b   :  { %p606_p5 = scmp.ne.s32.totalorder %s45_s13, %s605_s21  ;;  %p611_p7 = scmp.lt.s32.totalorder %s605_s21, %s605_s21 }
  0x2d   :  { %p612_p8 = por %p611_p7, %p610_p6 }
  0x2f   :  { %p613_p9 = pnand %p612_p8, %p606_p5 }
  0x31   :  { %616 = shalt.err (!%p613_p9)
}
  0x32   :  { %s672_s0 = smov 128   ;;  %s673_s12 = smov 8  }
  0x33   :  { %50 = dma.hbm_to_vmem [thread:$0]  %s810_s2, 256, %s45_s13, [#allocation7], %s672_s0, %s672_s0, %s673_s12  }
  0x34   :  { %s674_s24 = smov [#allocation9]   ;;  %s617_s28 = scalar_lea.hbm %s813_s5, 2048 }
  0x35   :  { %s60_s25 = sshll.u32 %s674_s24, 4  ;;  %p618_p10 = scmp.ne.s32.totalorder %s813_s5, %s617_s28  ;;  %s61_s25 = int_to_ptr.vmem [resolvable:$true] %s60_s25 }
  0x36   :  { %p621_p11 = scmp.lt.u32.totalorder %s617_s28, %s813_s5 }
  0x38   :  { %p623_p12 = pnand %p621_p11, %p618_p10 }
  0x3a   :  { %626 = shalt.err (!%p623_p12)
}
  0x3b   :  { %s627_s11 = scalar_lea.vmem %s61_s25, 2048  ;;  %p632_p0 = scmp.lt.s32.totalorder %s61_s25, %s61_s25 }
  0x3c   :  { %p628_p13 = scmp.ne.s32.totalorder %s61_s25, %s627_s11  ;;  %p633_p1 = scmp.lt.s32.totalorder %s627_s11, %s627_s11 }
  0x3e   :  { %p634_p2 = por %p633_p1, %p632_p0 }
  0x40   :  { %p635_p3 = pnand %p634_p2, %p628_p13 }
  0x42   :  { %638 = shalt.err (!%p635_p3)
}
  0x43   :  { %66 = dma.hbm_to_vmem [thread:$0]  %s813_s5, 2048, %s61_s25, [#allocation10], %s672_s0, %s672_s0, %s673_s12  }
  0x44   :  { %661 = dma.done.wait [#allocation4], 128  }
  0x45   :  { %662 = vsyncadd [#allocation4], 4294967168 }
  0x46   :  { %663 = dma.done.wait [#allocation7], 384  }
  0x47   :  { %664 = vsyncadd [#allocation7], 4294966912 }
  0x48   :  { %665 = dma.done.wait [#allocation10], 2048  }
  0x49   :  { %666 = vsyncadd [#allocation10], 4294965248  ;;  %v675_v0 = vmov 0.0   ;;  %vm676_vm0 = vmmov 0   ;;  %v677_v1 = vmov 0.0|0.0   ;;  %vm90_vm1 = vcmask 64512  }
  0x4a   :  { %462 = vmatprep.subr.mxu1 %v675_v0  ;;  %464 = vmatprep.mubr.msk.f32.mxu1 %vm676_vm0, %v675_v0  ;;  %v89_v2 = vld [vmem:[%s811_s3] sm:$0xff]  ;;  %v88_v3 = vld [vmem:[#allocation6] sm:$0xff]  ;;  %v86_v4 = vld [vmem:[#allocation8] sm:$0xff]  ;;  %vm164_vm2 = vcmask 130048   ;;  %v413_v46 = vstv %s816_s8  ;;  %s678_s21 = smov [#allocation11]   ;;  %vm415_vm3 = vcmask 57344  }
  0x4b   :  { %517 = vmatprep.subr.bf16.mxu0 %v677_v1  ;;  %506 = vmatprep.mubr.msk.f32.mxu0 %vm676_vm0, %v675_v0  ;;  %v87_v5 = vld [vmem:[#allocation8 + $0x8] sm:$0xff]  ;;  %v247_v6 = vld [vmem:[#allocation9] sm:$0xff]  ;;  %v248_v8 = vld [vmem:[#allocation9 + $0x8] sm:$0xff]  ;;  %s423_s0 = sshll.u32 %s678_s21, 4  ;;  %s424_s0 = int_to_ptr.vmem [resolvable:$true] %s423_s0 }
  0x4c   :  { %463 = vmatpush3.msra.mxu1 %v89_v2  ;;  %v515_v7 = vpack.c.bf16 %v87_v5, %v86_v4  ;;  %v249_v9 = vld [vmem:[#allocation9 + $0x10] sm:$0xff]  ;;  %v250_v10 = vld [vmem:[#allocation9 + $0x18] sm:$0xff]  ;;  %v518_v11 = vpack.c.bf16 %v248_v8, %v247_v6  ;;  %v85_v12 = vld [vmem:[#allocation3] sm:$0xff]  ;;  %s643_s12 = scalar_lea.vmem %s424_s0, 32  ;;  %p644_p5 = scmp.lt.s32.totalorder %s424_s0, %s424_s0 }
  0x4d   :  { %465 = vmatmul.mubr.msk.f32.vlgmr.msra.gmra.mrb[0].mxu1 %vm90_vm1, %v88_v3  ;;  %514 = vmatprep.subr.bf16.mxu1 %v677_v1  ;;  %v521_v13 = vpack.c.bf16 %v250_v10, %v249_v9  ;;  %v251_v14 = vld [vmem:[#allocation9 + $0x20] sm:$0xff]  ;;  %v252_v15 = vld [vmem:[#allocation9 + $0x28] sm:$0xff]  ;;  %v253_v17 = vld [vmem:[#allocation9 + $0x30] sm:$0xff] }
  0x4e   :  { %471 = vmatprep.mubr.msk.f32.mxu1 %vm676_vm0, %v675_v0  ;;  %516 = vmatpush3.bf16.msra.mxu1 %v515_v7  ;;  %v524_v16 = vpack.c.bf16 %v252_v15, %v251_v14  ;;  %v254_v18 = vld [vmem:[#allocation9 + $0x38] sm:$0xff]  ;;  %v255_v20 = vld [vmem:[#allocation9 + $0x40] sm:$0xff]  ;;  %v256_v21 = vld [vmem:[#allocation9 + $0x48] sm:$0xff] }
  0x4f   :  { %519 = vmatpush3.bf16.msra.mxu0 %v518_v11  ;;  %509 = vmatprep.subr.mxu1 %v675_v0  ;;  %v527_v19 = vpack.c.bf16 %v254_v18, %v253_v17  ;;  %v530_v22 = vpack.c.bf16 %v256_v21, %v255_v20  ;;  %v257_v23 = vld [vmem:[#allocation9 + $0x50] sm:$0xff]  ;;  %v258_v24 = vld [vmem:[#allocation9 + $0x58] sm:$0xff]  ;;  %v259_v26 = vld [vmem:[#allocation9 + $0x60] sm:$0xff] }
  0x50   :  { %520 = vmatprep.subr.bf16.mxu0 %v677_v1  ;;  %v533_v25 = vpack.c.bf16 %v258_v24, %v257_v23  ;;  %v260_v27 = vld [vmem:[#allocation9 + $0x68] sm:$0xff]  ;;  %v261_v29 = vld [vmem:[#allocation9 + $0x70] sm:$0xff]  ;;  %v262_v30 = vld [vmem:[#allocation9 + $0x78] sm:$0xff] }
  0x51   :  { %472 = vmatmul.mubr.msk.f32.vlgmr.msra.gmra.mrb[2].mxu1 %vm164_vm2, %v85_v12  ;;  %v536_v28 = vpack.c.bf16 %v260_v27, %v259_v26  ;;  %v539_v31 = vpack.c.bf16 %v262_v30, %v261_v29  ;;  %v436_v35 = vld [vmem:[%s812_s4] ss:$0 sm:$0xff] }
  0x52   :  { %511 = vmatprep.mubr.msk.f32.mxu1 %vm676_vm0, %v675_v0  ;;  %v437_v40 = vld [vmem:[%s814_s6] ss:$0 sm:$0xff]  ;;  %s639_s6 = scalar_lea.vmem %s424_s0, 16 }
  0x53   :  { %522 = vmatpush3.bf16.msra.mxu0 %v521_v13  ;;  %v341_v45 = vld [vmem:[%s815_s7] sm:$0xff]  ;;  %p640_p4 = scmp.ne.s32.totalorder %s424_s0, %s639_s6  ;;  %p645_p6 = scmp.lt.s32.totalorder %s643_s12, %s639_s6 }
  0x54   :  { %523 = vmatprep.subr.bf16.mxu0 %v677_v1 }
  0x55   :  { %p646_p7 = por %p645_p6, %p644_p5 }
  0x57   :  { %525 = vmatpush3.bf16.msra.mxu0 %v524_v16  ;;  %p647_p8 = pnand %p646_p7, %p640_p4 }
  0x58   :  { %526 = vmatprep.subr.bf16.mxu0 %v677_v1 }
  0x5b   :  { %528 = vmatpush3.bf16.msra.mxu0 %v527_v19 }
  0x5c   :  { %529 = vmatprep.subr.bf16.mxu0 %v677_v1 }
  0x5f   :  { %531 = vmatpush3.bf16.msra.mxu0 %v530_v22 }
  0x60   :  { %532 = vmatprep.subr.bf16.mxu0 %v677_v1 }
  0x63   :  { %534 = vmatpush3.bf16.msra.mxu0 %v533_v25 }
  0x64   :  { %535 = vmatprep.subr.bf16.mxu0 %v677_v1 }
  0x67   :  { %537 = vmatpush3.bf16.msra.mxu0 %v536_v28 }
  0x68   :  { %538 = vmatprep.subr.bf16.mxu0 %v677_v1 }
  0x6b   :  { %540 = vmatpush3.bf16.msra.mxu0 %v539_v31 }
 0x120   :  { %v160_v32 = vpop.f32.mrb[0].mxu1 }
 0x121   :  { %v466_v33 = vpop.f32.mrb[1].mxu1 }
 0x124   :  { %v234_v34 = vpop.f32.mrb[2].mxu1 }
 0x125   :  { %v235_v36 = vadd.f32 %v234_v34, %v160_v32  ;;  %v473_v37 = vpop.f32.mrb[3].mxu1 }
 0x127   :  { %v245_v38 = vadd.f32 %v436_v35, %v235_v36 }
 0x129   :  { %v246_v39 = vmax.f32 %v245_v38, 0.0 }
 0x12b   :  { %507 = vmatmul.mubr.f32.vlgmr.msra.gmra.mrb[0].mxu0 %v246_v39 }
 0x1fe   :  { %v336_v41 = vpop.f32.mrb[0].mxu0 }
 0x1ff   :  { %v337_v42 = vadd.f32 %v437_v40, %v336_v41  ;;  %v508_v43 = vpop.f32.mrb[1].mxu0 }
 0x201   :  { %v340_v44 = vmax.f32 %v337_v42, 0.0 }
 0x203   :  { %510 = vmatpush3.xpose.msra.mxu1 %v340_v44 }
 0x206   :  { %512 = vmatmul.mubr.f32.vlgmr.msra.gmra.mrb[4].mxu1 %v341_v45 }
 0x2d9   :  { %v408_v47 = vpop.f32.mrb[4].mxu1 }
 0x2da   :  { %v414_v48 = vadd.f32 %v413_v46, %v408_v47  ;;  %v513_v49 = vpop.f32.mrb[5].mxu1 }
 0x2dc   :  { %416 = vst.msk [vmem:[#allocation11] sm:$0x1] %vm415_vm3, %v414_v48 }
 0x2dd   :  { %650 = shalt.err (!%p647_p8)
}
 0x2de   :  { %s651_s8 = scalar_lea.hbm %s817_s9, 16 }
 0x2df   :  { %p652_p9 = scmp.ne.s32.totalorder %s817_s9, %s651_s8  ;;  %p655_p10 = scmp.lt.u32.totalorder %s651_s8, %s817_s9 }
 0x2e1   :  { %p657_p11 = pnand %p655_p10, %p652_p9 }
 0x2e3   :  { %660 = shalt.err (!%p657_p11)
}
 0x2e4   :  { %426 = dma.vmem_to_hbm [thread:$0]  %s424_s0, 16, %s817_s9, [#allocation5]  }
 0x2e5   :  { %667 = dma.done.wait [#allocation5], 16  }
 0x2e6   :  { %668 = vsyncadd [#allocation5], 4294967280 }
 0x2e7   :  { %430 = vsyncpa [#allocation4], 1 }
 0x2e8   :  { %431 = vsyncpa [#allocation7], 1 }
 0x2e9   :  { %432 = vsyncpa [#allocation10], 1 }
 0x2ea   :  { %433 = vsyncpa [#allocation5], 1 }

</bundles_post_ra>
